<compile_context>
chip_gen: v6e
topology: v6e:2x2x1
jax: 0.10.0
libtpu: 0.0.40
codegen_flags: <defaults>
</compile_context>

<pallas_src>
import functools

import jax
import jax.numpy as jnp
from jax.experimental import pallas as pl
from jax.experimental.pallas import tpu as pltpu

_LN_EPS = 1e-5  # matches nn.LayerNorm default


def _round_up(n, m):
    return ((n + m - 1) // m) * m


def _pad_to(a, shape):
    pads = [(0, t - s) for s, t in zip(a.shape, shape)]
    if all(p == (0, 0) for p in pads):
        return a
    return jnp.pad(a, pads)


def residual_kernel(x_ref, w1_ref, b1_ref, w2_ref, b2_ref, g_ref, bt_ref, o_ref,
                    *, inv_d, mm_dtype):
    """One row tile: LayerNorm(fc2(relu(fc1(x))) + x).

    Matmuls run on the MXU with `mm_dtype` operands and f32 accumulation; the
    residual / LayerNorm epilogue is f32 on the VPU.  Feature lanes beyond the
    true model width are zero-padded, and the LN statistics divide by the true
    width (`inv_d`), so padding does not perturb the result.
    """
    x_f32 = x_ref[...].astype(jnp.float32)                                # (TM, Dp)

    # fc1 + ReLU
    h = jnp.dot(x_ref[...].astype(mm_dtype), w1_ref[...],
                preferred_element_type=jnp.float32)                       # (TM, Hp)
    h = jnp.maximum(h + b1_ref[...], 0.0)

    # fc2 + residual add
    y = jnp.dot(h.astype(mm_dtype), w2_ref[...],
                preferred_element_type=jnp.float32)                       # (TM, Dp)
    y = y + b2_ref[...] + x_f32

    # LayerNorm over the last dim -- single sweep (mean and mean-of-squares),
    # rsqrt lands on the EUP slot.
    s1 = jnp.sum(y, axis=-1, keepdims=True)
    s2 = jnp.sum(y * y, axis=-1, keepdims=True)
    mean = s1 * inv_d
    var = jnp.maximum(s2 * inv_d - mean * mean, 0.0)
    yn = (y - mean) * jax.lax.rsqrt(var + _LN_EPS)
    o_ref[...] = (yn * g_ref[...] + bt_ref[...]).astype(o_ref.dtype)


def _vmem_bytes_estimate(tm, d_pad, h_pad, w_bytes, io_bytes, weight_bufs=1):
    """Rough VMEM footprint used to auto-shrink the row tile."""
    weights = weight_bufs * 2 * d_pad * h_pad * w_bytes            # w1 + w2
    params = 2 * 8 * (h_pad + 3 * d_pad) * 4                       # biases + LN params
    acts = 2 * tm * d_pad * io_bytes * 2                           # x in + out, 2 bufs
    interm = tm * h_pad * (4 + w_bytes) + tm * d_pad * (3 * 4 + w_bytes)
    return int(1.25 * (weights + params + acts + interm))


def _build_call(*, n_pad, d_pad, h_pad, tm, out_dtype, inv_d, mm_dtype,
                vmem_limit_bytes, single_buffer_weights):
    const_kw = {"pipeline_mode": pl.Buffered(1)} if single_buffer_weights else {}
    row = lambda i: (i, 0)
    const = lambda i: (0, 0)
    kernel = functools.partial(residual_kernel, inv_d=inv_d, mm_dtype=mm_dtype)
    return pl.pallas_call(
        kernel,
        out_shape=jax.ShapeDtypeStruct((n_pad, d_pad), out_dtype),
        grid_spec=pltpu.PrefetchScalarGridSpec(
            num_scalar_prefetch=0,
            grid=(n_pad // tm,),
            in_specs=[
                pl.BlockSpec((tm, d_pad), row),                     # x row-tile
                pl.BlockSpec((d_pad, h_pad), const, **const_kw),    # fc1 weight
                pl.BlockSpec((1, h_pad), const, **const_kw),        # fc1 bias
                pl.BlockSpec((h_pad, d_pad), const, **const_kw),    # fc2 weight
                pl.BlockSpec((1, d_pad), const, **const_kw),        # fc2 bias
                pl.BlockSpec((1, d_pad), const, **const_kw),        # LN gamma
                pl.BlockSpec((1, d_pad), const, **const_kw),        # LN beta
            ],
            out_specs=pl.BlockSpec((tm, d_pad), row),
        ),
        compiler_params=pltpu.CompilerParams(
            # "parallel": the row axis may shard across v7x's 2 TensorCores.
            dimension_semantics=("parallel",),
            vmem_limit_bytes=vmem_limit_bytes,
        ),
    )


def residual_forward(x, w1, b1, w2, b2, gamma, beta, *, tm=512, use_bf16=True):
    """x: (..., D).  w1: (D, H), w2: (H, D).  Returns same shape & dtype as x."""
    orig_shape = x.shape
    D = orig_shape[-1]
    H = w1.shape[1]
    x2d = x.reshape(-1, D)
    N = x2d.shape[0]

    # Lane-dense feature dims (multiples of 128).
    d_pad = _round_up(D, 128)
    h_pad = _round_up(H, 128)

    mm_dtype = jnp.bfloat16 if use_bf16 else jnp.float32
    w_bytes = jnp.dtype(mm_dtype).itemsize
    io_bytes = jnp.dtype(x.dtype).itemsize

    # VMEM budget: query the chip (128 MiB on v5e/v6e, 64 MiB per core on v7x).
    try:
        vmem_cap = int(pltpu.get_tpu_info().vmem_capacity_bytes)
    except Exception:
        vmem_cap = 64 * 1024 * 1024
    vmem_limit = int(0.85 * vmem_cap)

    # Row tile: as large as possible (MXU utilization + amortized per-step
    # overhead), bounded by the row count and the VMEM budget.
    tm = _round_up(max(8, min(tm, N)), 8)
    while tm > 8 and _vmem_bytes_estimate(tm, d_pad, h_pad, w_bytes, io_bytes) > vmem_limit:
        tm = max(8, (tm // 2 // 8) * 8)
    n_pad = _round_up(N, tm)

    # Zero-pad rows / feature lanes (exact: LN stats use the true D in-kernel).
    x_p = _pad_to(x2d, (n_pad, d_pad))
    w1_p = _pad_to(w1, (d_pad, h_pad)).astype(mm_dtype)
    w2_p = _pad_to(w2, (h_pad, d_pad)).astype(mm_dtype)
    b1_p = _pad_to(b1.reshape(1, H).astype(jnp.float32), (1, h_pad))
    b2_p = _pad_to(b2.reshape(1, D).astype(jnp.float32), (1, d_pad))
    g_p = _pad_to(gamma.reshape(1, D).astype(jnp.float32), (1, d_pad))
    bt_p = _pad_to(beta.reshape(1, D).astype(jnp.float32), (1, d_pad))
    args = (x_p, w1_p, b1_p, w2_p, b2_p, g_p, bt_p)

    call_kwargs = dict(n_pad=n_pad, d_pad=d_pad, h_pad=h_pad, tm=tm,
                       out_dtype=x.dtype, inv_d=1.0 / D, mm_dtype=mm_dtype,
                       vmem_limit_bytes=vmem_limit)
    try:
        # Weights/biases/LN params are grid-invariant -> request single buffering.
        out_p = _build_call(single_buffer_weights=True, **call_kwargs)(*args)
    except Exception:
        # Fallback if this jax build rejects pl.Buffered(1) on pallas_call specs.
        out_p = _build_call(single_buffer_weights=False, **call_kwargs)(*args)

    return out_p[:N, :D].reshape(orig_shape)


def residual_ref(x, w1, b1, w2, b2, gamma, beta, *, matmul_dtype=jnp.float32):
    """Pure-JAX reference; matmul_dtype mirrors the kernel's MXU operand dtype."""
    h = jnp.matmul(x.astype(matmul_dtype), w1.astype(matmul_dtype),
                   preferred_element_type=jnp.float32)
    h = jnp.maximum(h + b1, 0.0)
    y = jnp.matmul(h.astype(matmul_dtype), w2.astype(matmul_dtype),
                   preferred_element_type=jnp.float32)
    y = y + b2 + x.astype(jnp.float32)
    mean = jnp.mean(y, axis=-1, keepdims=True)
    var = jnp.mean((y - mean) ** 2, axis=-1, keepdims=True)
    return (y - mean) * jax.lax.rsqrt(var + _LN_EPS) * gamma + beta


if __name__ == "__main__":
    # Small but lane-dense shapes consistent with the module:
    # batch=2, seq=8, dims=128, hidden_dims=256 (dims/hidden are multiples of 128).
    batch, seq, dims, hidden = 2, 8, 128, 256

    key = jax.random.PRNGKey(0)
    kx, k1, kb1, k2, kb2 = jax.random.split(key, 5)

    x = jax.random.normal(kx, (batch, seq, dims), dtype=jnp.float32)

    # Deterministic synthetic params (shapes per nn.Linear / nn.LayerNorm).
    w1 = jax.random.normal(k1, (dims, hidden), dtype=jnp.float32) * (1.0 / dims ** 0.5)
    b1 = jax.random.normal(kb1, (hidden,), dtype=jnp.float32) * 0.01
    w2 = jax.random.normal(k2, (hidden, dims), dtype=jnp.float32) * (1.0 / hidden ** 0.5)
    b2 = jax.random.normal(kb2, (dims,), dtype=jnp.float32) * 0.01
    gamma = jnp.ones((dims,), dtype=jnp.float32)   # LayerNorm default init
    beta = jnp.zeros((dims,), dtype=jnp.float32)

    out = residual_forward(x, w1, b1, w2, b2, gamma, beta)
    jax.block_until_ready(out)

    # Tight check against a precision-matched reference (bf16 MXU operands,
    # f32 accumulation) -- validates the kernel wiring/padding/LN exactly.
    ref_match = residual_ref(x, w1, b1, w2, b2, gamma, beta, matmul_dtype=jnp.bfloat16)
    assert jnp.allclose(out, ref_match, atol=2e-3, rtol=2e-3), \
        "mismatch vs precision-matched reference"

    # Loose check against the full-f32 reference -- bounds the intended bf16
    # matmul precision tradeoff.
    ref_f32 = residual_ref(x, w1, b1, w2, b2, gamma, beta, matmul_dtype=jnp.float32)
    assert jnp.allclose(out, ref_f32, atol=1e-1, rtol=1e-1), \
        "deviation from f32 reference exceeds expected bf16-matmul error"

    print("KERNEL_OK")
</pallas_src>

<mosaic_0001>
module attributes {stable_mosaic.version = 11 : i64} {
  func.func @residual_kernel(%arg0: i32, %arg1: memref<16x128xf32, #tpu.memory_space<vmem>>, %arg2: memref<128x256xbf16, #tpu.memory_space<vmem>>, %arg3: memref<1x256xf32, #tpu.memory_space<vmem>>, %arg4: memref<256x128xbf16, #tpu.memory_space<vmem>>, %arg5: memref<1x128xf32, #tpu.memory_space<vmem>>, %arg6: memref<1x128xf32, #tpu.memory_space<vmem>>, %arg7: memref<1x128xf32, #tpu.memory_space<vmem>>, %arg8: memref<16x128xf32, #tpu.memory_space<vmem>>) attributes {dimension_semantics = [#tpu.dimension_semantics<parallel>], iteration_bounds = array<i64: 1>, scalar_prefetch = 0 : i64, scratch_operands = 0 : i64, tpu.core_type = #tpu.core_type<tc>, window_params = [{transform_indices = @transform_0, window_bounds = array<i64: 16, 128>}, {pipeline_mode = #tpu.pipeline_mode<synchronous>, transform_indices = @transform_1, window_bounds = array<i64: 128, 256>}, {pipeline_mode = #tpu.pipeline_mode<synchronous>, transform_indices = @transform_2, window_bounds = array<i64: 1, 256>}, {pipeline_mode = #tpu.pipeline_mode<synchronous>, transform_indices = @transform_3, window_bounds = array<i64: 256, 128>}, {pipeline_mode = #tpu.pipeline_mode<synchronous>, transform_indices = @transform_4, window_bounds = array<i64: 1, 128>}, {pipeline_mode = #tpu.pipeline_mode<synchronous>, transform_indices = @transform_5, window_bounds = array<i64: 1, 128>}, {pipeline_mode = #tpu.pipeline_mode<synchronous>, transform_indices = @transform_6, window_bounds = array<i64: 1, 128>}, {transform_indices = @transform_7, window_bounds = array<i64: 16, 128>}]} {
    %c0 = arith.constant 0 : index
    %c0_0 = arith.constant 0 : index
    %0 = vector.load %arg1[%c0, %c0_0] : memref<16x128xf32, #tpu.memory_space<vmem>>, vector<16x128xf32>
    %c0_1 = arith.constant 0 : index
    %c0_2 = arith.constant 0 : index
    %1 = vector.load %arg1[%c0_1, %c0_2] : memref<16x128xf32, #tpu.memory_space<vmem>>, vector<16x128xf32>
    %2 = arith.truncf %1 : vector<16x128xf32> to vector<16x128xbf16>
    %c0_3 = arith.constant 0 : index
    %c0_4 = arith.constant 0 : index
    %3 = vector.load %arg2[%c0_3, %c0_4] : memref<128x256xbf16, #tpu.memory_space<vmem>>, vector<128x256xbf16>
    %cst = arith.constant dense<0.000000e+00> : vector<16x256xf32>
    %4 = tpu.matmul %2, %3, %cst {dimension_numbers = #tpu.dot_dimension_numbers<[1], [0], [0], [1], [0, 0, 1, 1], [], []>} : vector<16x128xbf16>, vector<128x256xbf16>, vector<16x256xf32> -> vector<16x256xf32>
    %c0_5 = arith.constant 0 : index
    %c0_6 = arith.constant 0 : index
    %5 = vector.load %arg3[%c0_5, %c0_6] : memref<1x256xf32, #tpu.memory_space<vmem>>, vector<1x256xf32>
    %6 = vector.broadcast %5 : vector<1x256xf32> to vector<16x256xf32>
    %7 = arith.addf %4, %6 : vector<16x256xf32>
    %cst_7 = arith.constant 0.000000e+00 : f32
    %8 = vector.broadcast %cst_7 : f32 to vector<16x256xf32>
    %9 = arith.maximumf %7, %8 : vector<16x256xf32>
    %10 = arith.truncf %9 : vector<16x256xf32> to vector<16x256xbf16>
    %c0_8 = arith.constant 0 : index
    %c0_9 = arith.constant 0 : index
    %11 = vector.load %arg4[%c0_8, %c0_9] : memref<256x128xbf16, #tpu.memory_space<vmem>>, vector<256x128xbf16>
    %cst_10 = arith.constant dense<0.000000e+00> : vector<16x128xf32>
    %12 = tpu.matmul %10, %11, %cst_10 {dimension_numbers = #tpu.dot_dimension_numbers<[1], [0], [0], [1], [0, 0, 1, 1], [], []>} : vector<16x256xbf16>, vector<256x128xbf16>, vector<16x128xf32> -> vector<16x128xf32>
    %c0_11 = arith.constant 0 : index
    %c0_12 = arith.constant 0 : index
    %13 = vector.load %arg5[%c0_11, %c0_12] : memref<1x128xf32, #tpu.memory_space<vmem>>, vector<1x128xf32>
    %14 = vector.broadcast %13 : vector<1x128xf32> to vector<16x128xf32>
    %15 = arith.addf %12, %14 : vector<16x128xf32>
    %16 = arith.addf %15, %0 : vector<16x128xf32>
    %cst_13 = arith.constant dense<0.000000e+00> : vector<16xf32>
    %17 = vector.multi_reduction <add>, %16, %cst_13 [1] : vector<16x128xf32> to vector<16xf32>
    %18 = vector.shape_cast %17 : vector<16xf32> to vector<16x1xf32>
    %19 = arith.mulf %16, %16 : vector<16x128xf32>
    %cst_14 = arith.constant dense<0.000000e+00> : vector<16xf32>
    %20 = vector.multi_reduction <add>, %19, %cst_14 [1] : vector<16x128xf32> to vector<16xf32>
    %21 = vector.shape_cast %20 : vector<16xf32> to vector<16x1xf32>
    %cst_15 = arith.constant 7.812500e-03 : f32
    %22 = vector.broadcast %cst_15 : f32 to vector<16x1xf32>
    %23 = arith.mulf %18, %22 : vector<16x1xf32>
    %cst_16 = arith.constant 7.812500e-03 : f32
    %24 = vector.broadcast %cst_16 : f32 to vector<16x1xf32>
    %25 = arith.mulf %21, %24 : vector<16x1xf32>
    %26 = arith.mulf %23, %23 : vector<16x1xf32>
    %27 = arith.subf %25, %26 : vector<16x1xf32>
    %cst_17 = arith.constant 0.000000e+00 : f32
    %28 = vector.broadcast %cst_17 : f32 to vector<16x1xf32>
    %29 = arith.maximumf %27, %28 : vector<16x1xf32>
    %30 = vector.broadcast %23 : vector<16x1xf32> to vector<16x128xf32>
    %31 = arith.subf %16, %30 : vector<16x128xf32>
    %cst_18 = arith.constant 9.99999974E-6 : f32
    %32 = vector.broadcast %cst_18 : f32 to vector<16x1xf32>
    %33 = arith.addf %29, %32 : vector<16x1xf32>
    %34 = math.rsqrt %33 : vector<16x1xf32>
    %35 = vector.broadcast %34 : vector<16x1xf32> to vector<16x128xf32>
    %36 = arith.mulf %31, %35 : vector<16x128xf32>
    %c0_19 = arith.constant 0 : index
    %c0_20 = arith.constant 0 : index
    %37 = vector.load %arg6[%c0_19, %c0_20] : memref<1x128xf32, #tpu.memory_space<vmem>>, vector<1x128xf32>
    %38 = vector.broadcast %37 : vector<1x128xf32> to vector<16x128xf32>
    %39 = arith.mulf %36, %38 : vector<16x128xf32>
    %c0_21 = arith.constant 0 : index
    %c0_22 = arith.constant 0 : index
    %40 = vector.load %arg7[%c0_21, %c0_22] : memref<1x128xf32, #tpu.memory_space<vmem>>, vector<1x128xf32>
    %41 = vector.broadcast %40 : vector<1x128xf32> to vector<16x128xf32>
    %42 = arith.addf %39, %41 : vector<16x128xf32>
    %c0_23 = arith.constant 0 : index
    %c0_24 = arith.constant 0 : index
    %43 = vector.load %arg8[%c0_23, %c0_24] : memref<16x128xf32, #tpu.memory_space<vmem>>, vector<16x128xf32>
    tpu.vector_store %arg8[%c0_23, %c0_24], %42 {strides = array<i32>} : memref<16x128xf32, #tpu.memory_space<vmem>>, vector<16x128xf32>,
    return
  }
  func.func @transform_0(%arg0: i32) -> (i32, i32) {
    %c0_i32 = arith.constant 0 : i32
    %c0_i32_0 = arith.constant 0 : i32
    return %arg0, %c0_i32 : i32, i32
  }
  func.func @transform_1(%arg0: i32) -> (i32, i32) {
    %c0_i32 = arith.constant 0 : i32
    %c0_i32_0 = arith.constant 0 : i32
    %c0_i32_1 = arith.constant 0 : i32
    return %c0_i32, %c0_i32_0 : i32, i32
  }
  func.func @transform_2(%arg0: i32) -> (i32, i32) {
    %c0_i32 = arith.constant 0 : i32
    %c0_i32_0 = arith.constant 0 : i32
    %c0_i32_1 = arith.constant 0 : i32
    return %c0_i32, %c0_i32_0 : i32, i32
  }
  func.func @transform_3(%arg0: i32) -> (i32, i32) {
    %c0_i32 = arith.constant 0 : i32
    %c0_i32_0 = arith.constant 0 : i32
    %c0_i32_1 = arith.constant 0 : i32
    return %c0_i32, %c0_i32_0 : i32, i32
  }
  func.func @transform_4(%arg0: i32) -> (i32, i32) {
    %c0_i32 = arith.constant 0 : i32
    %c0_i32_0 = arith.constant 0 : i32
    %c0_i32_1 = arith.constant 0 : i32
    return %c0_i32, %c0_i32_0 : i32, i32
  }
  func.func @transform_5(%arg0: i32) -> (i32, i32) {
    %c0_i32 = arith.constant 0 : i32
    %c0_i32_0 = arith.constant 0 : i32
    %c0_i32_1 = arith.constant 0 : i32
    return %c0_i32, %c0_i32_0 : i32, i32
  }
  func.func @transform_6(%arg0: i32) -> (i32, i32) {
    %c0_i32 = arith.constant 0 : i32
    %c0_i32_0 = arith.constant 0 : i32
    %c0_i32_1 = arith.constant 0 : i32
    return %c0_i32, %c0_i32_0 : i32, i32
  }
  func.func @transform_7(%arg0: i32) -> (i32, i32) {
    %c0_i32 = arith.constant 0 : i32
    %c0_i32_0 = arith.constant 0 : i32
    return %arg0, %c0_i32 : i32, i32
  }
}

module attributes {stable_mosaic.version = 11 : i64} {
  func.func @residual_kernel(%arg0: i32, %arg1: memref<16x128xf32, #tpu.memory_space<vmem>>, %arg2: memref<128x256xbf16, #tpu.memory_space<vmem>>, %arg3: memref<1x256xf32, #tpu.memory_space<vmem>>, %arg4: memref<256x128xbf16, #tpu.memory_space<vmem>>, %arg5: memref<1x128xf32, #tpu.memory_space<vmem>>, %arg6: memref<1x128xf32, #tpu.memory_space<vmem>>, %arg7: memref<1x128xf32, #tpu.memory_space<vmem>>, %arg8: memref<16x128xf32, #tpu.memory_space<vmem>>) attributes {dimension_semantics = [#tpu.dimension_semantics<parallel>], iteration_bounds = array<i64: 1>, scalar_prefetch = 0 : i64, scratch_operands = 0 : i64, tpu.core_type = #tpu.core_type<tc>, window_params = [{transform_indices = @transform_0, window_bounds = array<i64: 16, 128>}, {pipeline_mode = #tpu.pipeline_mode<synchronous>, transform_indices = @transform_1, window_bounds = array<i64: 128, 256>}, {pipeline_mode = #tpu.pipeline_mode<synchronous>, transform_indices = @transform_2, window_bounds = array<i64: 1, 256>}, {pipeline_mode = #tpu.pipeline_mode<synchronous>, transform_indices = @transform_3, window_bounds = array<i64: 256, 128>}, {pipeline_mode = #tpu.pipeline_mode<synchronous>, transform_indices = @transform_4, window_bounds = array<i64: 1, 128>}, {pipeline_mode = #tpu.pipeline_mode<synchronous>, transform_indices = @transform_5, window_bounds = array<i64: 1, 128>}, {pipeline_mode = #tpu.pipeline_mode<synchronous>, transform_indices = @transform_6, window_bounds = array<i64: 1, 128>}, {transform_indices = @transform_7, window_bounds = array<i64: 16, 128>}]} {
    %c0 = arith.constant 0 : index
    %c0_0 = arith.constant 0 : index
    %0 = vector.load %arg1[%c0, %c0_0] : memref<16x128xf32, #tpu.memory_space<vmem>>, vector<16x128xf32>
    %c0_1 = arith.constant 0 : index
    %c0_2 = arith.constant 0 : index
    %1 = vector.load %arg1[%c0_1, %c0_2] : memref<16x128xf32, #tpu.memory_space<vmem>>, vector<16x128xf32>
    %2 = arith.truncf %1 : vector<16x128xf32> to vector<16x128xbf16>
    %c0_3 = arith.constant 0 : index
    %c0_4 = arith.constant 0 : index
    %3 = vector.load %arg2[%c0_3, %c0_4] : memref<128x256xbf16, #tpu.memory_space<vmem>>, vector<128x256xbf16>
    %cst = arith.constant dense<0.000000e+00> : vector<16x256xf32>
    %4 = tpu.matmul %2, %3, %cst {dimension_numbers = #tpu.dot_dimension_numbers<[1], [0], [0], [1], [0, 0, 1, 1], [], []>} : vector<16x128xbf16>, vector<128x256xbf16>, vector<16x256xf32> -> vector<16x256xf32>
    %c0_5 = arith.constant 0 : index
    %c0_6 = arith.constant 0 : index
    %5 = vector.load %arg3[%c0_5, %c0_6] : memref<1x256xf32, #tpu.memory_space<vmem>>, vector<1x256xf32>
    %6 = vector.broadcast %5 : vector<1x256xf32> to vector<16x256xf32>
    %7 = arith.addf %4, %6 : vector<16x256xf32>
    %cst_7 = arith.constant 0.000000e+00 : f32
    %8 = vector.broadcast %cst_7 : f32 to vector<16x256xf32>
    %9 = arith.maximumf %7, %8 : vector<16x256xf32>
    %10 = arith.truncf %9 : vector<16x256xf32> to vector<16x256xbf16>
    %c0_8 = arith.constant 0 : index
    %c0_9 = arith.constant 0 : index
    %11 = vector.load %arg4[%c0_8, %c0_9] : memref<256x128xbf16, #tpu.memory_space<vmem>>, vector<256x128xbf16>
    %cst_10 = arith.constant dense<0.000000e+00> : vector<16x128xf32>
    %12 = tpu.matmul %10, %11, %cst_10 {dimension_numbers = #tpu.dot_dimension_numbers<[1], [0], [0], [1], [0, 0, 1, 1], [], []>} : vector<16x256xbf16>, vector<256x128xbf16>, vector<16x128xf32> -> vector<16x128xf32>
    %c0_11 = arith.constant 0 : index
    %c0_12 = arith.constant 0 : index
    %13 = vector.load %arg5[%c0_11, %c0_12] : memref<1x128xf32, #tpu.memory_space<vmem>>, vector<1x128xf32>
    %14 = vector.broadcast %13 : vector<1x128xf32> to vector<16x128xf32>
    %15 = arith.addf %12, %14 : vector<16x128xf32>
    %16 = arith.addf %15, %0 : vector<16x128xf32>
    %cst_13 = arith.constant dense<0.000000e+00> : vector<16xf32>
    %17 = vector.multi_reduction <add>, %16, %cst_13 [1] : vector<16x128xf32> to vector<16xf32>
    %18 = vector.shape_cast %17 : vector<16xf32> to vector<16x1xf32>
    %19 = arith.mulf %16, %16 : vector<16x128xf32>
    %cst_14 = arith.constant dense<0.000000e+00> : vector<16xf32>
    %20 = vector.multi_reduction <add>, %19, %cst_14 [1] : vector<16x128xf32> to vector<16xf32>
    %21 = vector.shape_cast %20 : vector<16xf32> to vector<16x1xf32>
    %cst_15 = arith.constant 7.812500e-03 : f32
    %22 = vector.broadcast %cst_15 : f32 to vector<16x1xf32>
    %23 = arith.mulf %18, %22 : vector<16x1xf32>
    %cst_16 = arith.constant 7.812500e-03 : f32
    %24 = vector.broadcast %cst_16 : f32 to vector<16x1xf32>
    %25 = arith.mulf %21, %24 : vector<16x1xf32>
    %26 = arith.mulf %23, %23 : vector<16x1xf32>
    %27 = arith.subf %25, %26 : vector<16x1xf32>
    %cst_17 = arith.constant 0.000000e+00 : f32
    %28 = vector.broadcast %cst_17 : f32 to vector<16x1xf32>
    %29 = arith.maximumf %27, %28 : vector<16x1xf32>
    %30 = vector.broadcast %23 : vector<16x1xf32> to vector<16x128xf32>
    %31 = arith.subf %16, %30 : vector<16x128xf32>
    %cst_18 = arith.constant 9.99999974E-6 : f32
    %32 = vector.broadcast %cst_18 : f32 to vector<16x1xf32>
    %33 = arith.addf %29, %32 : vector<16x1xf32>
    %34 = math.rsqrt %33 : vector<16x1xf32>
    %35 = vector.broadcast %34 : vector<16x1xf32> to vector<16x128xf32>
    %36 = arith.mulf %31, %35 : vector<16x128xf32>
    %c0_19 = arith.constant 0 : index
    %c0_20 = arith.constant 0 : index
    %37 = vector.load %arg6[%c0_19, %c0_20] : memref<1x128xf32, #tpu.memory_space<vmem>>, vector<1x128xf32>
    %38 = vector.broadcast %37 : vector<1x128xf32> to vector<16x128xf32>
    %39 = arith.mulf %36, %38 : vector<16x128xf32>
    %c0_21 = arith.constant 0 : index
    %c0_22 = arith.constant 0 : index
    %40 = vector.load %arg7[%c0_21, %c0_22] : memref<1x128xf32, #tpu.memory_space<vmem>>, vector<1x128xf32>
    %41 = vector.broadcast %40 : vector<1x128xf32> to vector<16x128xf32>
    %42 = arith.addf %39, %41 : vector<16x128xf32>
    %c0_23 = arith.constant 0 : index
    %c0_24 = arith.constant 0 : index
    %43 = vector.load %arg8[%c0_23, %c0_24] : memref<16x128xf32, #tpu.memory_space<vmem>>, vector<16x128xf32>
    tpu.vector_store %arg8[%c0_23, %c0_24], %42 {strides = array<i32>} : memref<16x128xf32, #tpu.memory_space<vmem>>, vector<16x128xf32>,
    return
  }
  func.func @transform_0(%arg0: i32) -> (i32, i32) {
    %c0_i32 = arith.constant 0 : i32
    %c0_i32_0 = arith.constant 0 : i32
    return %arg0, %c0_i32 : i32, i32
  }
  func.func @transform_1(%arg0: i32) -> (i32, i32) {
    %c0_i32 = arith.constant 0 : i32
    %c0_i32_0 = arith.constant 0 : i32
    %c0_i32_1 = arith.constant 0 : i32
    return %c0_i32, %c0_i32_0 : i32, i32
  }
  func.func @transform_2(%arg0: i32) -> (i32, i32) {
    %c0_i32 = arith.constant 0 : i32
    %c0_i32_0 = arith.constant 0 : i32
    %c0_i32_1 = arith.constant 0 : i32
    return %c0_i32, %c0_i32_0 : i32, i32
  }
  func.func @transform_3(%arg0: i32) -> (i32, i32) {
    %c0_i32 = arith.constant 0 : i32
    %c0_i32_0 = arith.constant 0 : i32
    %c0_i32_1 = arith.constant 0 : i32
    return %c0_i32, %c0_i32_0 : i32, i32
  }
  func.func @transform_4(%arg0: i32) -> (i32, i32) {
    %c0_i32 = arith.constant 0 : i32
    %c0_i32_0 = arith.constant 0 : i32
    %c0_i32_1 = arith.constant 0 : i32
    return %c0_i32, %c0_i32_0 : i32, i32
  }
  func.func @transform_5(%arg0: i32) -> (i32, i32) {
    %c0_i32 = arith.constant 0 : i32
    %c0_i32_0 = arith.constant 0 : i32
    %c0_i32_1 = arith.constant 0 : i32
    return %c0_i32, %c0_i32_0 : i32, i32
  }
  func.func @transform_6(%arg0: i32) -> (i32, i32) {
    %c0_i32 = arith.constant 0 : i32
    %c0_i32_0 = arith.constant 0 : i32
    %c0_i32_1 = arith.constant 0 : i32
    return %c0_i32, %c0_i32_0 : i32, i32
  }
  func.func @transform_7(%arg0: i32) -> (i32, i32) {
    %c0_i32 = arith.constant 0 : i32
    %c0_i32_0 = arith.constant 0 : i32
    return %arg0, %c0_i32 : i32, i32
  }
}

</mosaic_0001>

<bundles_post_ra>
// kernel: tpu_custom_call.1
= control target key start
LH: loop header
LB: loop body
LE: loop exit
PB: predicated region body
PF: predicated region fallthrough
CT: control target
= control target key end

     0   :  { %12 = vsyncpa [#allocation3], 0  ;;  %s751_s0 = inlined_call_operand.hbm [shape: f32[16,128], index: 0, kind: input, shape index: {}]   ;;  %s752_s1 = inlined_call_operand.hbm [shape: bf16[128,256], index: 1, kind: input, shape index: {}]   ;;  %s753_s2 = inlined_call_operand.vmem [shape: f32[1,256], index: 2, kind: input, shape index: {}]   ;;  %s754_s3 = inlined_call_operand.hbm [shape: bf16[256,128], index: 3, kind: input, shape index: {}]   ;;  %s755_s4 = inlined_call_operand.vmem [shape: f32[1,128], index: 4, kind: input, shape index: {}]   ;;  %s756_s5 = inlined_call_operand.vmem [shape: f32[1,128], index: 5, kind: input, shape index: {}]   ;;  %s757_s6 = inlined_call_operand.vmem [shape: f32[1,128], index: 6, kind: input, shape index: {}]   ;;  %s758_s7 = inlined_call_operand.hbm [shape: f32[16,128], index: 7, kind: output, shape index: {}]  }
   0x1   :  { %13 = vsyncpa [#allocation6], 0 }
   0x2   :  { %14 = vsyncpa [#allocation4], 0  ;;  %s669_s24 = smov [#allocation5]   ;;  %s670_s26 = smov [#allocation2]  }
   0x3   :  { %s32_s25 = sshll.u32 %s669_s24, 4  ;;  %s20_s27 = sshll.u32 %s670_s26, 4  ;;  %s33_s25 = int_to_ptr.vmem [resolvable:$true] %s32_s25  ;;  %s21_s27 = int_to_ptr.vmem [resolvable:$true] %s20_s27 }
   0x4   :  { %s591_s28 = scalar_lea.vmem %s33_s25, 2048  ;;  %p596_p1 = scmp.lt.s32.totalorder %s33_s25, %s33_s25 }
   0x5   :  { %p592_p0 = scmp.ne.s32.totalorder %s33_s25, %s591_s28  ;;  %p597_p2 = scmp.lt.s32.totalorder %s591_s28, %s591_s28 }
   0x7   :  { %p598_p3 = por %p597_p2, %p596_p1 }
   0x9   :  { %p599_p4 = pnand %p598_p3, %p592_p0 }
   0xb   :  { %602 = shalt.err (!%p599_p4)
}
   0xc   :  { %s671_s29 = smov 128   ;;  %s672_s30 = smov 8  }
   0xd   :  { %38 = dma.hbm_to_vmem [thread:$0]  %s752_s1, 2048, %s33_s25, [#allocation6], %s671_s29, %s671_s29, %s672_s30  }
   0xe   :  { %s611_s10 = scalar_lea.vmem %s21_s27, 256  ;;  %p616_p6 = scmp.lt.s32.totalorder %s21_s27, %s21_s27 }
   0xf   :  { %p612_p5 = scmp.ne.s32.totalorder %s21_s27, %s611_s10  ;;  %p617_p7 = scmp.lt.s32.totalorder %s611_s10, %s611_s10 }
  0x11   :  { %p618_p8 = por %p617_p7, %p616_p6 }
  0x13   :  { %p619_p9 = pnand %p618_p8, %p612_p5 }
  0x15   :  { %622 = shalt.err (!%p619_p9)
}
  0x16   :  { %26 = dma.hbm_to_vmem [thread:$0]  %s751_s0, 256, %s21_s27, [#allocation3], %s671_s29, %s671_s29, %s672_s30  }
  0x17   :  { %s673_s13 = smov [#allocation7]  }
  0x18   :  { %s46_s14 = sshll.u32 %s673_s13, 4  ;;  %s47_s14 = int_to_ptr.vmem [resolvable:$true] %s46_s14 }
  0x19   :  { %s631_s15 = scalar_lea.vmem %s47_s14, 2048  ;;  %p636_p11 = scmp.lt.s32.totalorder %s47_s14, %s47_s14 }
  0x1a   :  { %p632_p10 = scmp.ne.s32.totalorder %s47_s14, %s631_s15  ;;  %p637_p12 = scmp.lt.s32.totalorder %s631_s15, %s631_s15 }
  0x1c   :  { %p638_p13 = por %p637_p12, %p636_p11 }
  0x1e   :  { %p639_p0 = pnand %p638_p13, %p632_p10 }
  0x20   :  { %642 = shalt.err (!%p639_p0)
}
  0x21   :  { %s674_s1 = smov 64   ;;  %s675_s16 = smov 4  }
  0x22   :  { %52 = dma.hbm_to_vmem [thread:$0]  %s754_s3, 2048, %s47_s14, [#allocation6], %s674_s1, %s674_s1, %s675_s16  }
  0x23   :  { %663 = dma.done.wait [#allocation3], 256  }
  0x24   :  { %664 = vsyncadd [#allocation3], 4294967040 }
  0x25   :  { %665 = dma.done.wait [#allocation6], 4096  }
  0x26   :  { %666 = vsyncadd [#allocation6], 4294963200  ;;  %v676_v0 = vmov 0   ;;  %v539_v1 = vld [vmem:[#allocation5 + $0x74] ss:$8 sps:$4 sm:$0xff]   ;;  %v567_v16 = vld [vmem:[#allocation7 + $0x68] sm:$0xff]   ;;  %v90_v36 = vlaneseq }
  0x27   :  { %212 = vmatprep.mubr.bf16.mxu0 %v676_v0  ;;  %v541_v2 = vld [vmem:[#allocation5 + $0x70] ss:$8 sps:$4 sm:$0xff]   ;;  %180 = vmatprep.subr.bf16.mxu0 %v539_v1  ;;  %v542_v3 = vld [vmem:[#allocation5 + $0x64] ss:$8 sps:$4 sm:$0xff]   ;;  %v544_v4 = vld [vmem:[#allocation5 + $0x60] ss:$8 sps:$4 sm:$0xff]  }
  0x28   :  { %181 = vmatpush1.bf16.msra.mxu0 %v541_v2  ;;  %v545_v5 = vld [vmem:[#allocation5 + $0x54] ss:$8 sps:$4 sm:$0xff]   ;;  %v547_v6 = vld [vmem:[#allocation5 + $0x50] ss:$8 sps:$4 sm:$0xff]   ;;  %v548_v7 = vld [vmem:[#allocation5 + $0x44] ss:$8 sps:$4 sm:$0xff]  }
  0x29   :  { %182 = vmatprep.subr.bf16.mxu0 %v542_v3  ;;  %v550_v8 = vld [vmem:[#allocation5 + $0x40] ss:$8 sps:$4 sm:$0xff]   ;;  %v551_v9 = vld [vmem:[#allocation5 + $0x34] ss:$8 sps:$4 sm:$0xff]   ;;  %v553_v11 = vld [vmem:[#allocation5 + $0x30] ss:$8 sps:$4 sm:$0xff]  }
  0x2a   :  { %v563_v10 = vld [vmem:[#allocation7 + $0x78] sm:$0xff]   ;;  %v554_v13 = vld [vmem:[#allocation5 + $0x24] ss:$8 sps:$4 sm:$0xff]   ;;  %v565_v14 = vld [vmem:[#allocation7 + $0x70] sm:$0xff]   ;;  %v91_v37 = vshrl.u32 %v90_v36, 7  ;;  %s677_s23 = smov [#allocation8]  }
  0x2b   :  { %v564_v12 = vld [vmem:[#allocation7 + $0x38] sm:$0xff]   ;;  %508 = vmatprep.subr.bf16.mxu1 %v563_v10  ;;  %v566_v15 = vld [vmem:[#allocation7 + $0x30] sm:$0xff]   ;;  %v556_v17 = vld [vmem:[#allocation5 + $0x20] ss:$8 sps:$4 sm:$0xff]   ;;  %s460_s24 = sshll.u32 %s677_s23, 4  ;;  %s461_s24 = int_to_ptr.vmem [resolvable:$true] %s460_s24 }
  0x2c   :  { %183 = vmatpush1.bf16.msra.mxu0 %v544_v4  ;;  %509 = vmatpush3.bf16.msra.mxu1 %v564_v12  ;;  %v557_v18 = vld [vmem:[#allocation5 + $0x14] ss:$8 sps:$4 sm:$0xff]   ;;  %v568_v19 = vld [vmem:[#allocation7 + $0x28] sm:$0xff]   ;;  %v569_v20 = vld [vmem:[#allocation7 + $0x60] sm:$0xff]   ;;  %v96_v38 = vsub.s32 1, %v91_v37  ;;  %v92_v39 = vsub.s32 0, %v91_v37  ;;  %p648_p2 = scmp.lt.s32.totalorder %s461_s24, %s461_s24 }
  0x2d   :  { %184 = vmatprep.subr.bf16.mxu0 %v545_v5  ;;  %510 = vmatprep.subr.bf16.mxu1 %v565_v14  ;;  %v559_v21 = vld [vmem:[#allocation5 + $0x10] ss:$8 sps:$4 sm:$0xff]   ;;  %v570_v22 = vld [vmem:[#allocation7 + $0x20] sm:$0xff]   ;;  %v575_v32 = vld [vmem:[#allocation7 + $0x48] sm:$0xff]   ;;  %s643_s25 = scalar_lea.vmem %s461_s24, 256 }
  0x2e   :  { %v560_v23 = vld [vmem:[#allocation5 + $0x4] ss:$8 sps:$4 sm:$0xff]   ;;  %v571_v24 = vld [vmem:[#allocation7 + $0x58] sm:$0xff]   ;;  %v562_v25 = vld [vmem:[#allocation5] ss:$8 sps:$4 sm:$0xff]   ;;  %p644_p1 = scmp.ne.s32.totalorder %s461_s24, %s643_s25  ;;  %p649_p3 = scmp.lt.s32.totalorder %s643_s25, %s643_s25 }
  0x2f   :  { %v69_v26 = vld [vmem:[#allocation2] sm:$0xff]  ;;  %v70_v27 = vld [vmem:[#allocation2 + $0x8] sm:$0xff]  ;;  %v576_v33 = vld [vmem:[#allocation7 + $0x8] sm:$0xff]  }
  0x30   :  { %185 = vmatpush1.bf16.msra.mxu0 %v547_v6  ;;  %511 = vmatpush3.bf16.msra.mxu1 %v566_v15  ;;  %v572_v28 = vld [vmem:[#allocation7 + $0x18] sm:$0xff]   ;;  %v71_v29 = vpack.c.bf16 %v70_v27, %v69_v26  ;;  %v573_v30 = vld [vmem:[#allocation7 + $0x50] sm:$0xff]   ;;  %v577_v34 = vld [vmem:[#allocation7 + $0x40] sm:$0xff]   ;;  %p650_p4 = por %p649_p3, %p648_p2 }
  0x31   :  { %186 = vmatprep.subr.bf16.mxu0 %v548_v7  ;;  %512 = vmatprep.subr.bf16.mxu1 %v567_v16  ;;  %v574_v31 = vld [vmem:[#allocation7 + $0x10] sm:$0xff]   ;;  %v578_v35 = vld [vmem:[#allocation7] sm:$0xff]  }
  0x32   :  { %v88_v40 = vld [vmem:[%s753_s2] sm:$0x3]  ;;  %p651_p5 = pnand %p650_p4, %p644_p1 }
  0x33   :  { %v97_v42 = vrot.slane %v88_v40, %v96_v38  ;;  %v93_v43 = vrot.slane %v88_v40, %v92_v39  ;;  %v489_v58 = vld [vmem:[%s755_s4] ss:$0 sm:$0xff] }
  0x34   :  { %187 = vmatpush1.bf16.msra.mxu0 %v550_v8  ;;  %513 = vmatpush3.bf16.msra.mxu1 %v568_v19 }
  0x35   :  { %188 = vmatprep.subr.bf16.mxu0 %v551_v9  ;;  %514 = vmatprep.subr.bf16.mxu1 %v569_v20 }
  0x38   :  { %189 = vmatpush1.bf16.msra.mxu0 %v553_v11  ;;  %515 = vmatpush3.bf16.msra.mxu1 %v570_v22 }
  0x39   :  { %190 = vmatprep.subr.bf16.mxu0 %v554_v13  ;;  %516 = vmatprep.subr.bf16.mxu1 %v571_v24  ;;  %v506_v24 = vld [vmem:[%s756_s5] ss:$0 sm:$0xff] }
  0x3c   :  { %191 = vmatpush1.bf16.msra.mxu0 %v556_v17  ;;  %517 = vmatpush3.bf16.msra.mxu1 %v572_v28 }
  0x3d   :  { %192 = vmatprep.subr.bf16.mxu0 %v557_v18  ;;  %518 = vmatprep.subr.bf16.mxu1 %v573_v30 }
  0x40   :  { %193 = vmatpush1.bf16.msra.mxu0 %v559_v21  ;;  %519 = vmatpush3.bf16.msra.mxu1 %v574_v31 }
  0x41   :  { %194 = vmatprep.subr.bf16.mxu0 %v560_v23  ;;  %520 = vmatprep.subr.bf16.mxu1 %v575_v32 }
  0x44   :  { %195 = vmatpush1.bf16.msra.mxu0 %v562_v25  ;;  %521 = vmatpush3.bf16.msra.mxu1 %v576_v33 }
  0x45   :  { %522 = vmatprep.subr.bf16.mxu1 %v577_v34 }
  0x47   :  { %213 = vmatmul.mubr.bf16.vlgmr.msra.gmra.mxu0 %v71_v29 }
  0x48   :  { %523 = vmatpush3.bf16.msra.mxu1 %v578_v35 }
 0x107   :  { %v214_v41 = vpop.f32.mrf.mxu0 }
 0x108   :  { %v215_v48 = vadd.f32 %v214_v41, %v93_v43 }
 0x109   :  { %v216_v44 = vpop.f32.mrf.mxu0 }
 0x10a   :  { %v217_v46 = vadd.f32 %v216_v44, %v97_v42  ;;  %v223_v54 = vmax.f32 %v215_v48, 0.0 }
 0x10b   :  { %v218_v45 = vpop.f32.mrf.mxu0 }
 0x10c   :  { %v219_v47 = vadd.f32 %v218_v45, %v93_v43  ;;  %v224_v52 = vmax.f32 %v217_v46, 0.0 }
 0x10d   :  { %v220_v49 = vpop.f32.mrf.mxu0 }
 0x10e   :  { %v221_v50 = vadd.f32 %v220_v49, %v97_v42  ;;  %v225_v51 = vmax.f32 %v219_v47, 0.0 }
 0x110   :  { %v226_v53 = vmax.f32 %v221_v50, 0.0  ;;  %v227_v56 = vpack.c.bf16 %v225_v51, %v223_v54 }
 0x112   :  { %v228_v55 = vpack.c.bf16 %v226_v53, %v224_v52 }
 0x114   :  { %396 = vmatprep.mubr.bf16.mxu1 %v228_v55 }
 0x115   :  { %397 = vmatmul.mubr.bf16.vlgmr.msra.gmra.mxu1 %v227_v56 }
 0x1d5   :  { %v524_v57 = vpop.f32.mrf.mxu1 }
 0x1d7   :  { %v525_v59 = vpop.f32.mrf.mxu1 }
 0x1d8   :  { %v526_v60 = vadd.f32 %v525_v59, %v524_v57 }
 0x1d9   :  { %v527_v61 = vpop.f32.mrf.mxu1 }
 0x1da   :  { %v399_v62 = vadd.f32 %v526_v60, %v489_v58 }
 0x1db   :  { %v528_v63 = vpop.f32.mrf.mxu1 }
 0x1dc   :  { %v529_v0 = vadd.f32 %v528_v63, %v527_v61  ;;  %v405_v1 = vadd.f32 %v399_v62, %v69_v26  ;;  %v507_v26 = vld [vmem:[%s757_s6] ss:$0 sm:$0xff] }
 0x1de   :  { %v402_v2 = vadd.f32 %v529_v0, %v489_v58  ;;  %407 = vadd.xlane.f32.xlu0 %v405_v1  ;;  %v411_v3 = vmul.f32 %v405_v1, %v405_v1 }
 0x1e0   :  { %413 = vadd.xlane.f32.xlu1 %v411_v3  ;;  %v406_v4 = vadd.f32 %v402_v2, %v70_v27 }
 0x1e2   :  { %409 = vadd.xlane.f32.xlu0 %v406_v4  ;;  %v412_v5 = vmul.f32 %v406_v4, %v406_v4 }
 0x1e4   :  { %415 = vadd.xlane.f32.xlu1 %v412_v5 }
 0x267   :  { %v408_v6 = vpop.xlane.xlu0 %407 }
 0x268   :  { %v417_v7 = vmul.f32 0.0078125, %v408_v6 }
 0x269   :  { %v414_v8 = vpop.xlane.xlu1 %413 }
 0x26a   :  { %v421_v9 = vmul.f32 %v417_v7, %v417_v7  ;;  %v419_v10 = vmul.f32 0.0078125, %v414_v8  ;;  %v427_v22 = vsub.f32 %v405_v1, %v417_v7 }
 0x26b   :  { %v410_v11 = vpop.xlane.xlu0 %409 }
 0x26c   :  { %v423_v12 = vsub.f32 %v419_v10, %v421_v9  ;;  %v418_v13 = vmul.f32 0.0078125, %v410_v11 }
 0x26d   :  { %v416_v14 = vpop.xlane.xlu1 %415 }
 0x26e   :  { %v425_v15 = vmax.f32 %v423_v12, 0.0  ;;  %v422_v16 = vmul.f32 %v418_v13, %v418_v13  ;;  %v420_v17 = vmul.f32 0.0078125, %v416_v14  ;;  %v428_v27 = vsub.f32 %v406_v4, %v418_v13 }
 0x270   :  { %v429_v18 = vadd.f32 1e-05, %v425_v15  ;;  %v424_v19 = vsub.f32 %v420_v17, %v422_v16 }
 0x272   :  { %579 = vrsqrt.f32 %v429_v18  ;;  %v426_v20 = vmax.f32 %v424_v19, 0.0 }
 0x274   :  { %v430_v21 = vadd.f32 1e-05, %v426_v20 }
 0x276   :  { %581 = vrsqrt.f32 %v430_v21 }
 0x27f   :  { %v580_v23 = vpop.eup %579 }
 0x280   :  { %v433_v25 = vmul.f32 %v580_v23, %v427_v22 }
 0x282   :  { %v442_v28 = vmul.f32 %v506_v24, %v433_v25 }
 0x283   :  { %v582_v29 = vpop.eup %581 }
 0x284   :  { %v434_v30 = vmul.f32 %v582_v29, %v428_v27  ;;  %v451_v31 = vadd.f32 %v507_v26, %v442_v28 }
 0x286   :  { %v443_v32 = vmul.f32 %v506_v24, %v434_v30  ;;  %453 = vst [vmem:[#allocation8] sm:$0xff] %v451_v31 }
 0x288   :  { %v452_v33 = vadd.f32 %v507_v26, %v443_v32 }
 0x28a   :  { %454 = vst [vmem:[#allocation8 + $0x8] sm:$0xff] %v452_v33 }
 0x28b   :  { %654 = shalt.err (!%p651_p5)
}
 0x28c   :  { %466 = dma.vmem_to_hbm [thread:$0]  %s461_s24, 256, %s758_s7, [#allocation4], %s671_s29, %s671_s29, %s672_s30  }
 0x28d   :  { %667 = dma.done.wait [#allocation4], 256  }
 0x28e   :  { %668 = vsyncadd [#allocation4], 4294967040 }
 0x28f   :  { %470 = vsyncpa [#allocation3], 1 }
 0x290   :  { %471 = vsyncpa [#allocation6], 1 }
 0x291   :  { %472 = vsyncpa [#allocation4], 1 }

// kernel: tpu_custom_call.1
= control target key start
LH: loop header
LB: loop body
LE: loop exit
PB: predicated region body
PF: predicated region fallthrough
CT: control target
= control target key end

     0   :  { %12 = vsyncpa [#allocation3], 0  ;;  %s751_s0 = inlined_call_operand.hbm [shape: f32[16,128], index: 0, kind: input, shape index: {}]   ;;  %s752_s1 = inlined_call_operand.hbm [shape: bf16[128,256], index: 1, kind: input, shape index: {}]   ;;  %s753_s2 = inlined_call_operand.vmem [shape: f32[1,256], index: 2, kind: input, shape index: {}]   ;;  %s754_s3 = inlined_call_operand.hbm [shape: bf16[256,128], index: 3, kind: input, shape index: {}]   ;;  %s755_s4 = inlined_call_operand.vmem [shape: f32[1,128], index: 4, kind: input, shape index: {}]   ;;  %s756_s5 = inlined_call_operand.vmem [shape: f32[1,128], index: 5, kind: input, shape index: {}]   ;;  %s757_s6 = inlined_call_operand.vmem [shape: f32[1,128], index: 6, kind: input, shape index: {}]   ;;  %s758_s7 = inlined_call_operand.hbm [shape: f32[16,128], index: 7, kind: output, shape index: {}]  }
   0x1   :  { %13 = vsyncpa [#allocation6], 0 }
   0x2   :  { %14 = vsyncpa [#allocation4], 0  ;;  %s669_s24 = smov [#allocation5]   ;;  %s670_s26 = smov [#allocation2]  }
   0x3   :  { %s32_s25 = sshll.u32 %s669_s24, 4  ;;  %s20_s27 = sshll.u32 %s670_s26, 4  ;;  %s33_s25 = int_to_ptr.vmem [resolvable:$true] %s32_s25  ;;  %s21_s27 = int_to_ptr.vmem [resolvable:$true] %s20_s27 }
   0x4   :  { %s591_s28 = scalar_lea.vmem %s33_s25, 2048  ;;  %p596_p1 = scmp.lt.s32.totalorder %s33_s25, %s33_s25 }
   0x5   :  { %p592_p0 = scmp.ne.s32.totalorder %s33_s25, %s591_s28  ;;  %p597_p2 = scmp.lt.s32.totalorder %s591_s28, %s591_s28 }
   0x7   :  { %p598_p3 = por %p597_p2, %p596_p1 }
   0x9   :  { %p599_p4 = pnand %p598_p3, %p592_p0 }
   0xb   :  { %602 = shalt.err (!%p599_p4)
}
   0xc   :  { %s671_s29 = smov 128   ;;  %s672_s30 = smov 8  }
   0xd   :  { %38 = dma.hbm_to_vmem [thread:$0]  %s752_s1, 2048, %s33_s25, [#allocation6], %s671_s29, %s671_s29, %s672_s30  }
   0xe   :  { %s611_s10 = scalar_lea.vmem %s21_s27, 256  ;;  %p616_p6 = scmp.lt.s32.totalorder %s21_s27, %s21_s27 }
   0xf   :  { %p612_p5 = scmp.ne.s32.totalorder %s21_s27, %s611_s10  ;;  %p617_p7 = scmp.lt.s32.totalorder %s611_s10, %s611_s10 }
  0x11   :  { %p618_p8 = por %p617_p7, %p616_p6 }
  0x13   :  { %p619_p9 = pnand %p618_p8, %p612_p5 }
  0x15   :  { %622 = shalt.err (!%p619_p9)
}
  0x16   :  { %26 = dma.hbm_to_vmem [thread:$0]  %s751_s0, 256, %s21_s27, [#allocation3], %s671_s29, %s671_s29, %s672_s30  }
  0x17   :  { %s673_s13 = smov [#allocation7]  }
  0x18   :  { %s46_s14 = sshll.u32 %s673_s13, 4  ;;  %s47_s14 = int_to_ptr.vmem [resolvable:$true] %s46_s14 }
  0x19   :  { %s631_s15 = scalar_lea.vmem %s47_s14, 2048  ;;  %p636_p11 = scmp.lt.s32.totalorder %s47_s14, %s47_s14 }
  0x1a   :  { %p632_p10 = scmp.ne.s32.totalorder %s47_s14, %s631_s15  ;;  %p637_p12 = scmp.lt.s32.totalorder %s631_s15, %s631_s15 }
  0x1c   :  { %p638_p13 = por %p637_p12, %p636_p11 }
  0x1e   :  { %p639_p0 = pnand %p638_p13, %p632_p10 }
  0x20   :  { %642 = shalt.err (!%p639_p0)
}
  0x21   :  { %s674_s1 = smov 64   ;;  %s675_s16 = smov 4  }
  0x22   :  { %52 = dma.hbm_to_vmem [thread:$0]  %s754_s3, 2048, %s47_s14, [#allocation6], %s674_s1, %s674_s1, %s675_s16  }
  0x23   :  { %663 = dma.done.wait [#allocation3], 256  }
  0x24   :  { %664 = vsyncadd [#allocation3], 4294967040 }
  0x25   :  { %665 = dma.done.wait [#allocation6], 4096  }
  0x26   :  { %666 = vsyncadd [#allocation6], 4294963200  ;;  %v676_v0 = vmov 0   ;;  %v539_v1 = vld [vmem:[#allocation5 + $0x74] ss:$8 sps:$4 sm:$0xff]   ;;  %v567_v16 = vld [vmem:[#allocation7 + $0x68] sm:$0xff]   ;;  %v90_v36 = vlaneseq }
  0x27   :  { %212 = vmatprep.mubr.bf16.mxu0 %v676_v0  ;;  %v541_v2 = vld [vmem:[#allocation5 + $0x70] ss:$8 sps:$4 sm:$0xff]   ;;  %180 = vmatprep.subr.bf16.mxu0 %v539_v1  ;;  %v542_v3 = vld [vmem:[#allocation5 + $0x64] ss:$8 sps:$4 sm:$0xff]   ;;  %v544_v4 = vld [vmem:[#allocation5 + $0x60] ss:$8 sps:$4 sm:$0xff]  }
  0x28   :  { %181 = vmatpush1.bf16.msra.mxu0 %v541_v2  ;;  %v545_v5 = vld [vmem:[#allocation5 + $0x54] ss:$8 sps:$4 sm:$0xff]   ;;  %v547_v6 = vld [vmem:[#allocation5 + $0x50] ss:$8 sps:$4 sm:$0xff]   ;;  %v548_v7 = vld [vmem:[#allocation5 + $0x44] ss:$8 sps:$4 sm:$0xff]  }
  0x29   :  { %182 = vmatprep.subr.bf16.mxu0 %v542_v3  ;;  %v550_v8 = vld [vmem:[#allocation5 + $0x40] ss:$8 sps:$4 sm:$0xff]   ;;  %v551_v9 = vld [vmem:[#allocation5 + $0x34] ss:$8 sps:$4 sm:$0xff]   ;;  %v553_v11 = vld [vmem:[#allocation5 + $0x30] ss:$8 sps:$4 sm:$0xff]  }
  0x2a   :  { %v563_v10 = vld [vmem:[#allocation7 + $0x78] sm:$0xff]   ;;  %v554_v13 = vld [vmem:[#allocation5 + $0x24] ss:$8 sps:$4 sm:$0xff]   ;;  %v565_v14 = vld [vmem:[#allocation7 + $0x70] sm:$0xff]   ;;  %v91_v37 = vshrl.u32 %v90_v36, 7  ;;  %s677_s23 = smov [#allocation8]  }
  0x2b   :  { %v564_v12 = vld [vmem:[#allocation7 + $0x38] sm:$0xff]   ;;  %508 = vmatprep.subr.bf16.mxu1 %v563_v10  ;;  %v566_v15 = vld [vmem:[#allocation7 + $0x30] sm:$0xff]   ;;  %v556_v17 = vld [vmem:[#allocation5 + $0x20] ss:$8 sps:$4 sm:$0xff]   ;;  %s460_s24 = sshll.u32 %s677_s23, 4  ;;  %s461_s24 = int_to_ptr.vmem [resolvable:$true] %s460_s24 }
  0x2c   :  { %183 = vmatpush1.bf16.msra.mxu0 %v544_v4  ;;  %509 = vmatpush3.bf16.msra.mxu1 %v564_v12  ;;  %v557_v18 = vld [vmem:[#allocation5 + $0x14] ss:$8 sps:$4 sm:$0xff]   ;;  %v568_v19 = vld [vmem:[#allocation7 + $0x28] sm:$0xff]   ;;  %v569_v20 = vld [vmem:[#allocation7 + $0x60] sm:$0xff]   ;;  %v96_v38 = vsub.s32 1, %v91_v37  ;;  %v92_v39 = vsub.s32 0, %v91_v37  ;;  %p648_p2 = scmp.lt.s32.totalorder %s461_s24, %s461_s24 }
  0x2d   :  { %184 = vmatprep.subr.bf16.mxu0 %v545_v5  ;;  %510 = vmatprep.subr.bf16.mxu1 %v565_v14  ;;  %v559_v21 = vld [vmem:[#allocation5 + $0x10] ss:$8 sps:$4 sm:$0xff]   ;;  %v570_v22 = vld [vmem:[#allocation7 + $0x20] sm:$0xff]   ;;  %v575_v32 = vld [vmem:[#allocation7 + $0x48] sm:$0xff]   ;;  %s643_s25 = scalar_lea.vmem %s461_s24, 256 }
  0x2e   :  { %v560_v23 = vld [vmem:[#allocation5 + $0x4] ss:$8 sps:$4 sm:$0xff]   ;;  %v571_v24 = vld [vmem:[#allocation7 + $0x58] sm:$0xff]   ;;  %v562_v25 = vld [vmem:[#allocation5] ss:$8 sps:$4 sm:$0xff]   ;;  %p644_p1 = scmp.ne.s32.totalorder %s461_s24, %s643_s25  ;;  %p649_p3 = scmp.lt.s32.totalorder %s643_s25, %s643_s25 }
  0x2f   :  { %v69_v26 = vld [vmem:[#allocation2] sm:$0xff]  ;;  %v70_v27 = vld [vmem:[#allocation2 + $0x8] sm:$0xff]  ;;  %v576_v33 = vld [vmem:[#allocation7 + $0x8] sm:$0xff]  }
  0x30   :  { %185 = vmatpush1.bf16.msra.mxu0 %v547_v6  ;;  %511 = vmatpush3.bf16.msra.mxu1 %v566_v15  ;;  %v572_v28 = vld [vmem:[#allocation7 + $0x18] sm:$0xff]   ;;  %v71_v29 = vpack.c.bf16 %v70_v27, %v69_v26  ;;  %v573_v30 = vld [vmem:[#allocation7 + $0x50] sm:$0xff]   ;;  %v577_v34 = vld [vmem:[#allocation7 + $0x40] sm:$0xff]   ;;  %p650_p4 = por %p649_p3, %p648_p2 }
  0x31   :  { %186 = vmatprep.subr.bf16.mxu0 %v548_v7  ;;  %512 = vmatprep.subr.bf16.mxu1 %v567_v16  ;;  %v574_v31 = vld [vmem:[#allocation7 + $0x10] sm:$0xff]   ;;  %v578_v35 = vld [vmem:[#allocation7] sm:$0xff]  }
  0x32   :  { %v88_v40 = vld [vmem:[%s753_s2] sm:$0x3]  ;;  %p651_p5 = pnand %p650_p4, %p644_p1 }
  0x33   :  { %v97_v42 = vrot.slane %v88_v40, %v96_v38  ;;  %v93_v43 = vrot.slane %v88_v40, %v92_v39  ;;  %v489_v58 = vld [vmem:[%s755_s4] ss:$0 sm:$0xff] }
  0x34   :  { %187 = vmatpush1.bf16.msra.mxu0 %v550_v8  ;;  %513 = vmatpush3.bf16.msra.mxu1 %v568_v19 }
  0x35   :  { %188 = vmatprep.subr.bf16.mxu0 %v551_v9  ;;  %514 = vmatprep.subr.bf16.mxu1 %v569_v20 }
  0x38   :  { %189 = vmatpush1.bf16.msra.mxu0 %v553_v11  ;;  %515 = vmatpush3.bf16.msra.mxu1 %v570_v22 }
  0x39   :  { %190 = vmatprep.subr.bf16.mxu0 %v554_v13  ;;  %516 = vmatprep.subr.bf16.mxu1 %v571_v24  ;;  %v506_v24 = vld [vmem:[%s756_s5] ss:$0 sm:$0xff] }
  0x3c   :  { %191 = vmatpush1.bf16.msra.mxu0 %v556_v17  ;;  %517 = vmatpush3.bf16.msra.mxu1 %v572_v28 }
  0x3d   :  { %192 = vmatprep.subr.bf16.mxu0 %v557_v18  ;;  %518 = vmatprep.subr.bf16.mxu1 %v573_v30 }
  0x40   :  { %193 = vmatpush1.bf16.msra.mxu0 %v559_v21  ;;  %519 = vmatpush3.bf16.msra.mxu1 %v574_v31 }
  0x41   :  { %194 = vmatprep.subr.bf16.mxu0 %v560_v23  ;;  %520 = vmatprep.subr.bf16.mxu1 %v575_v32 }
  0x44   :  { %195 = vmatpush1.bf16.msra.mxu0 %v562_v25  ;;  %521 = vmatpush3.bf16.msra.mxu1 %v576_v33 }
  0x45   :  { %522 = vmatprep.subr.bf16.mxu1 %v577_v34 }
  0x47   :  { %213 = vmatmul.mubr.bf16.vlgmr.msra.gmra.mxu0 %v71_v29 }
  0x48   :  { %523 = vmatpush3.bf16.msra.mxu1 %v578_v35 }
 0x107   :  { %v214_v41 = vpop.f32.mrf.mxu0 }
 0x108   :  { %v215_v48 = vadd.f32 %v214_v41, %v93_v43 }
 0x109   :  { %v216_v44 = vpop.f32.mrf.mxu0 }
 0x10a   :  { %v217_v46 = vadd.f32 %v216_v44, %v97_v42  ;;  %v223_v54 = vmax.f32 %v215_v48, 0.0 }
 0x10b   :  { %v218_v45 = vpop.f32.mrf.mxu0 }
 0x10c   :  { %v219_v47 = vadd.f32 %v218_v45, %v93_v43  ;;  %v224_v52 = vmax.f32 %v217_v46, 0.0 }
 0x10d   :  { %v220_v49 = vpop.f32.mrf.mxu0 }
 0x10e   :  { %v221_v50 = vadd.f32 %v220_v49, %v97_v42  ;;  %v225_v51 = vmax.f32 %v219_v47, 0.0 }
 0x110   :  { %v226_v53 = vmax.f32 %v221_v50, 0.0  ;;  %v227_v56 = vpack.c.bf16 %v225_v51, %v223_v54 }
 0x112   :  { %v228_v55 = vpack.c.bf16 %v226_v53, %v224_v52 }
 0x114   :  { %396 = vmatprep.mubr.bf16.mxu1 %v228_v55 }
 0x115   :  { %397 = vmatmul.mubr.bf16.vlgmr.msra.gmra.mxu1 %v227_v56 }
 0x1d5   :  { %v524_v57 = vpop.f32.mrf.mxu1 }
 0x1d7   :  { %v525_v59 = vpop.f32.mrf.mxu1 }
 0x1d8   :  { %v526_v60 = vadd.f32 %v525_v59, %v524_v57 }
 0x1d9   :  { %v527_v61 = vpop.f32.mrf.mxu1 }
 0x1da   :  { %v399_v62 = vadd.f32 %v526_v60, %v489_v58 }
 0x1db   :  { %v528_v63 = vpop.f32.mrf.mxu1 }
 0x1dc   :  { %v529_v0 = vadd.f32 %v528_v63, %v527_v61  ;;  %v405_v1 = vadd.f32 %v399_v62, %v69_v26  ;;  %v507_v26 = vld [vmem:[%s757_s6] ss:$0 sm:$0xff] }
 0x1de   :  { %v402_v2 = vadd.f32 %v529_v0, %v489_v58  ;;  %407 = vadd.xlane.f32.xlu0 %v405_v1  ;;  %v411_v3 = vmul.f32 %v405_v1, %v405_v1 }
 0x1e0   :  { %413 = vadd.xlane.f32.xlu1 %v411_v3  ;;  %v406_v4 = vadd.f32 %v402_v2, %v70_v27 }
 0x1e2   :  { %409 = vadd.xlane.f32.xlu0 %v406_v4  ;;  %v412_v5 = vmul.f32 %v406_v4, %v406_v4 }
 0x1e4   :  { %415 = vadd.xlane.f32.xlu1 %v412_v5 }
 0x267   :  { %v408_v6 = vpop.xlane.xlu0 %407 }
 0x268   :  { %v417_v7 = vmul.f32 0.0078125, %v408_v6 }
 0x269   :  { %v414_v8 = vpop.xlane.xlu1 %413 }
 0x26a   :  { %v421_v9 = vmul.f32 %v417_v7, %v417_v7  ;;  %v419_v10 = vmul.f32 0.0078125, %v414_v8  ;;  %v427_v22 = vsub.f32 %v405_v1, %v417_v7 }
 0x26b   :  { %v410_v11 = vpop.xlane.xlu0 %409 }
 0x26c   :  { %v423_v12 = vsub.f32 %v419_v10, %v421_v9  ;;  %v418_v13 = vmul.f32 0.0078125, %v410_v11 }
 0x26d   :  { %v416_v14 = vpop.xlane.xlu1 %415 }
 0x26e   :  { %v425_v15 = vmax.f32 %v423_v12, 0.0  ;;  %v422_v16 = vmul.f32 %v418_v13, %v418_v13  ;;  %v420_v17 = vmul.f32 0.0078125, %v416_v14  ;;  %v428_v27 = vsub.f32 %v406_v4, %v418_v13 }
 0x270   :  { %v429_v18 = vadd.f32 1e-05, %v425_v15  ;;  %v424_v19 = vsub.f32 %v420_v17, %v422_v16 }
 0x272   :  { %579 = vrsqrt.f32 %v429_v18  ;;  %v426_v20 = vmax.f32 %v424_v19, 0.0 }
 0x274   :  { %v430_v21 = vadd.f32 1e-05, %v426_v20 }
 0x276   :  { %581 = vrsqrt.f32 %v430_v21 }
 0x27f   :  { %v580_v23 = vpop.eup %579 }
 0x280   :  { %v433_v25 = vmul.f32 %v580_v23, %v427_v22 }
 0x282   :  { %v442_v28 = vmul.f32 %v506_v24, %v433_v25 }
 0x283   :  { %v582_v29 = vpop.eup %581 }
 0x284   :  { %v434_v30 = vmul.f32 %v582_v29, %v428_v27  ;;  %v451_v31 = vadd.f32 %v507_v26, %v442_v28 }
 0x286   :  { %v443_v32 = vmul.f32 %v506_v24, %v434_v30  ;;  %453 = vst [vmem:[#allocation8] sm:$0xff] %v451_v31 }
 0x288   :  { %v452_v33 = vadd.f32 %v507_v26, %v443_v32 }
 0x28a   :  { %454 = vst [vmem:[#allocation8 + $0x8] sm:$0xff] %v452_v33 }
 0x28b   :  { %654 = shalt.err (!%p651_p5)
}
 0x28c   :  { %466 = dma.vmem_to_hbm [thread:$0]  %s461_s24, 256, %s758_s7, [#allocation4], %s671_s29, %s671_s29, %s672_s30  }
 0x28d   :  { %667 = dma.done.wait [#allocation4], 256  }
 0x28e   :  { %668 = vsyncadd [#allocation4], 4294967040 }
 0x28f   :  { %470 = vsyncpa [#allocation3], 1 }
 0x290   :  { %471 = vsyncpa [#allocation6], 1 }
 0x291   :  { %472 = vsyncpa [#allocation4], 1 }

</bundles_post_ra>
